<compile_context>
chip_gen: v7x
topology: tpu7x:2x2x1
jax: 0.10.0
libtpu: 0.0.40
codegen_flags: <defaults>
</compile_context>

<pallas_src>
import functools

import jax
import jax.numpy as jnp
from jax.experimental import pallas as pl
from jax.experimental.pallas import tpu as pltpu


def _round_up(x, m):
    return (x + m - 1) // m * m


# --------------------------------------------------------------------------- #
# Kernel
# --------------------------------------------------------------------------- #
def fused_gcn_kernel(a_ref, x_ref, w_ref, b_ref, o_ref, h_ref, *,
                     embed_dim, block_rows, n_compute):
    """One grid step = one (pass, row-block).

    pass 0               : copy-only seed, h[0, row block] <- X row block
    pass p in 1..n_compute: layer l = p - 1  (l == 0 is the node encoder)
    """
    p = pl.program_id(0)
    i = pl.program_id(1)
    row = pl.multiple_of(i * block_rows, block_rows)

    # ---- pass 0: seed the ping-pong feature buffer, one row block at a time.
    # Padded lanes / rows of X are zero, so padded lanes of h stay exactly zero
    # through every layer (zero-padded W columns + zero bias lanes).  The
    # layernorm below divides by embed_dim over all fp lanes and relies on this
    # invariant; padded ROWS pick up bias/norm garbage but A_hat's padded
    # columns are zero and the output is sliced to [:n], so it never leaks.
    @pl.when(p == 0)
    def _seed():
        h_ref[0, pl.ds(row, block_rows), :] = x_ref[...]

    # ---- passes 1..n_compute: layers.
    @pl.when(p > 0)
    def _compute():
        l = p - 1                       # 0 == node encoder, 1.. == GCN conv layers
        src = jax.lax.rem(l, 2)         # previous layer's features
        dst = jax.lax.rem(p, 2)         # this layer's output slot

        # MXU: aggregate then transform; bf16 operands, f32 accumulation.
        h_agg = jnp.dot(a_ref[...], h_ref[src],
                        preferred_element_type=jnp.float32)
        h_lin = jnp.dot(h_agg.astype(jnp.bfloat16), w_ref[...],
                        preferred_element_type=jnp.float32) + b_ref[...]

        # Encoder layer: relu only (norm_encoder is never applied in forward()).
        @pl.when(l == 0)
        def _enc():
            h_out = jnp.maximum(h_lin, 0.0)
            h_ref[dst, pl.ds(row, block_rows), :] = h_out.astype(jnp.bfloat16)

            @pl.when(p == n_compute)            # only reachable if num_layer == 0
            def _():
                o_ref[...] = h_out.astype(o_ref.dtype)

        # GCN conv layers: layernorm (no affine), relu except on the last layer.
        # XLU lane-reductions + EUP rsqrt only execute on this branch.
        @pl.when(l > 0)
        def _gcn():
            fp_dim = h_lin.shape[-1]
            lane = jax.lax.broadcasted_iota(jnp.int32, (1, fp_dim), 1)
            feat_mask = lane < embed_dim        # padded lanes of h_lin are exactly 0
            inv_e = 1.0 / embed_dim
            mean = jnp.sum(h_lin, axis=-1, keepdims=True) * inv_e
            centered = h_lin - mean
            var = jnp.sum(jnp.where(feat_mask, centered * centered, 0.0),
                          axis=-1, keepdims=True) * inv_e
            h_norm = jnp.where(feat_mask,
                               centered * jax.lax.rsqrt(var + 1e-5), 0.0)
            apply_relu = l < n_compute - 1       # last GCN layer: no relu
            h_out = jnp.where(apply_relu, jnp.maximum(h_norm, 0.0), h_norm)
            h_ref[dst, pl.ds(row, block_rows), :] = h_out.astype(jnp.bfloat16)

            @pl.when(p == n_compute)             # final layer -> f32 result store
            def _():
                o_ref[...] = h_out.astype(o_ref.dtype)


# --------------------------------------------------------------------------- #
# Tiling / VMEM budgeting
# --------------------------------------------------------------------------- #
def _pick_vmem_limit():
    """Generation-aware scoped-VMEM limit (~96 MiB on 128-MiB parts, ~48 MiB v7x)."""
    cap = 64 * 1024 * 1024
    try:
        cap = int(pltpu.get_tpu_info().vmem_capacity_bytes)
    except Exception:
        pass
    return int(min(cap * 3 // 4, 100 * 1024 * 1024))


def _pick_tiling(n, fp, vmem_limit, row_block):
    """Choose (n_pad, tm, row_blocks).

    Prefer keeping A_hat fully VMEM-resident (constant block index -> one HBM
    read for ALL layers).  Otherwise stream A in the largest 16-aligned row
    blocks that fit the budget (A row-block cost dominates: 2 bufs * tm*n_pad*2B).
    """
    n_pad = _round_up(n, 16)                 # bf16 packs 2 rows per sublane
    headroom = 2 << 20
    resident_bytes = (4 * n_pad * n_pad      # A   : 2 bufs x bf16
                      + 4 * n_pad * fp       # X   : 2 bufs x bf16
                      + 4 * n_pad * fp       # h   : ping-pong bf16 scratch
                      + 8 * n_pad * fp       # out : 2 bufs x f32
                      + 32 * n_pad * fp      # f32 intermediates / spill slack
                      + 8 * fp * fp + headroom)
    if resident_bytes <= vmem_limit:
        return n_pad, n_pad, 1

    fixed = 4 * n_pad * fp + 8 * fp * fp + headroom        # h scratch + W/b
    per_row = 4 * n_pad + 4 * fp + 8 * fp + 32 * fp        # A + X + out blocks + temps
    tm = (max(vmem_limit - fixed, 0) // per_row) // 16 * 16
    tm = max(16, min(row_block, tm, n_pad))
    n_pad = _round_up(n, tm)
    # TODO(synk): for graphs where even the h ping-pong (2*n_pad*fp bf16) exceeds
    # VMEM, h would have to round-trip HBM per layer (not implemented).
    return n_pad, tm, n_pad // tm


# --------------------------------------------------------------------------- #
# Operand packing (cacheable across calls: A_hat / weights are static per graph)
# --------------------------------------------------------------------------- #
def pack_gcn_operands(a_hat, nfeat, params, num_layer, n_pad, fp):
    n, input_dim = nfeat.shape
    embed_dim = params["w_enc"].shape[1]
    n_compute = num_layer + 1

    a_pad = jnp.zeros((n_pad, n_pad), jnp.bfloat16)
    a_pad = a_pad.at[:n, :n].set(a_hat.astype(jnp.bfloat16))
    x_pad = jnp.zeros((n_pad, fp), jnp.bfloat16)
    x_pad = x_pad.at[:n, :input_dim].set(nfeat.astype(jnp.bfloat16))

    w_all = jnp.zeros((n_compute, fp, fp), jnp.float32)
    b_all = jnp.zeros((n_compute, 1, fp), jnp.float32)
    w_all = w_all.at[0, :input_dim, :embed_dim].set(params["w_enc"])
    b_all = b_all.at[0, 0, :embed_dim].set(params["b_enc"].reshape(-1))
    for i in range(num_layer):
        w_all = w_all.at[i + 1, :embed_dim, :embed_dim].set(params["w"][i])
        b_all = b_all.at[i + 1, 0, :embed_dim].set(params["b"][i].reshape(-1))
    return a_pad, x_pad, w_all.astype(jnp.bfloat16), b_all


# --------------------------------------------------------------------------- #
# pallas_call wrapper
# --------------------------------------------------------------------------- #
def _gcn_link_call(a_pad, x_pad, w_all, b_all, *, n_compute, embed_dim, tm,
                   row_blocks, vmem_limit):
    n_pad, fp = x_pad.shape
    last = n_compute

    kernel = functools.partial(fused_gcn_kernel, embed_dim=embed_dim,
                               block_rows=tm, n_compute=n_compute)

    # A: streamed row-block-wise during compute passes; when row_blocks == 1 the
    #    index never changes -> A is DMA'd from HBM exactly once for all layers.
    a_map = lambda p, i: (jnp.where(p == 0, 0, i), 0)
    # X: streamed row-block-wise only during the seed pass, then pinned at block 0
    #    (no full-X residency across the whole grid).
    x_map = lambda p, i: (jnp.where(p == 0, i, 0), 0)
    w_map = lambda p, i: (jnp.maximum(p - 1, 0), 0, 0)
    b_map = lambda p, i: (jnp.maximum(p - 1, 0), 0, 0)
    # Output block index only advances on the final pass -> a single HBM
    # writeback per row block instead of one per layer.
    o_map = lambda p, i: (jnp.where(p == last, i, 0), 0)

    flops = n_compute * (2 * n_pad * n_pad * fp + 2 * n_pad * fp * fp)
    a_reads = 1 if row_blocks == 1 else n_compute
    bytes_accessed = (a_reads * a_pad.size * 2 + x_pad.size * 2
                      + w_all.size * 2 + b_all.size * 4 + n_pad * fp * 4)

    return pl.pallas_call(
        kernel,
        out_shape=jax.ShapeDtypeStruct((n_pad, fp), jnp.float32),
        grid_spec=pltpu.PrefetchScalarGridSpec(
            num_scalar_prefetch=0,
            grid=(n_compute + 1, row_blocks),
            in_specs=[
                pl.BlockSpec((tm, n_pad), a_map),          # A_hat row block
                pl.BlockSpec((tm, fp), x_map),             # X row block (seed pass)
                pl.BlockSpec((None, fp, fp), w_map),       # W_l
                pl.BlockSpec((None, 1, fp), b_map),        # b_l
            ],
            out_specs=pl.BlockSpec((tm, fp), o_map),
            scratch_shapes=[pltpu.VMEM((2, n_pad, fp), jnp.bfloat16)],  # h ping-pong
        ),
        compiler_params=pltpu.CompilerParams(
            # Both axes 'arbitrary': every row block of pass p must complete before
            # any row block of pass p+1 (h lives in per-core VMEM scratch).
            # TODO(synk): split row blocks across v7x's 2 TensorCores (core axis +
            # VMEM_SHARED h + core_barrier between passes).
            dimension_semantics=("arbitrary", "arbitrary"),
            vmem_limit_bytes=int(vmem_limit),
        ),
        cost_estimate=pl.CostEstimate(
            flops=int(flops),
            transcendentals=int((n_compute - 1) * n_pad),
            bytes_accessed=int(bytes_accessed),
        ),
    )(a_pad, x_pad, w_all, b_all)


def gcn_link_forward(a_hat, nfeat, params, num_layer, *, row_block=512):
    """Forward pass of GCN_Link (eval mode, no skip connections), fully fused."""
    n, input_dim = nfeat.shape
    embed_dim = params["w_enc"].shape[1]
    n_compute = num_layer + 1
    fp = _round_up(max(input_dim, embed_dim), 128)   # lane-dense padded feature dim

    vmem_limit = _pick_vmem_limit()
    n_pad, tm, row_blocks = _pick_tiling(n, fp, vmem_limit, _round_up(row_block, 16))

    a_pad, x_pad, w_all, b_all = pack_gcn_operands(a_hat, nfeat, params,
                                                   num_layer, n_pad, fp)
    out = _gcn_link_call(a_pad, x_pad, w_all, b_all,
                         n_compute=n_compute, embed_dim=embed_dim, tm=tm,
                         row_blocks=row_blocks, vmem_limit=vmem_limit)
    return out[:n, :embed_dim]


# --------------------------------------------------------------------------- #
# Helpers + demo
# --------------------------------------------------------------------------- #
def normalized_adjacency(adj):
    """D^{-1/2} (A + I) D^{-1/2} as a dense matrix (f32)."""
    n = adj.shape[0]
    a = adj + jnp.eye(n, dtype=adj.dtype)
    deg = jnp.sum(a, axis=1)
    d_inv_sqrt = jax.lax.rsqrt(jnp.maximum(deg, 1e-12))
    return a * d_inv_sqrt[:, None] * d_inv_sqrt[None, :]


def init_params(key, input_dim, embed_dim, num_layer):
    keys = jax.random.split(key, 2 * (num_layer + 1))

    def glorot(k, fan_in, fan_out):
        scale = jnp.sqrt(6.0 / (fan_in + fan_out))
        return jax.random.uniform(k, (fan_in, fan_out), jnp.float32, -scale, scale)

    params = {
        "w_enc": glorot(keys[0], input_dim, embed_dim),
        "b_enc": jnp.zeros((1, embed_dim), jnp.float32),
        "w": [],
        "b": [],
    }
    for i in range(num_layer):
        params["w"].append(glorot(keys[2 + i], embed_dim, embed_dim))
        params["b"].append(jnp.zeros((1, embed_dim), jnp.float32))
    return params


def gcn_link_reference(a_hat, nfeat, params, num_layer, eps=1e-5):
    """Pure-JAX f32 reference of the same forward pass."""
    h = jax.nn.relu(a_hat @ nfeat @ params["w_enc"] + params["b_enc"])
    for l in range(num_layer):
        h = a_hat @ h @ params["w"][l] + params["b"][l]
        mean = jnp.mean(h, axis=-1, keepdims=True)
        var = jnp.mean((h - mean) ** 2, axis=-1, keepdims=True)
        h = (h - mean) * jax.lax.rsqrt(var + eps)
        if l != num_layer - 1:
            h = jax.nn.relu(h)
    return h


if __name__ == "__main__":
    # Small, deterministic problem: 128 nodes, input_dim=16, embed_dim=32, 2 layers.
    N, INPUT_DIM, EMBED_DIM, NUM_LAYER = 128, 16, 32, 2

    key = jax.random.PRNGKey(0)
    k_feat, k_adj, k_param = jax.random.split(key, 3)

    nfeat = jax.random.normal(k_feat, (N, INPUT_DIM), jnp.float32)
    # Random undirected graph (~10% edge density), symmetrized, zero diagonal.
    rand = jax.random.uniform(k_adj, (N, N))
    adj = (rand < 0.1).astype(jnp.float32)
    adj = jnp.maximum(adj, adj.T) * (1.0 - jnp.eye(N, dtype=jnp.float32))
    a_hat = normalized_adjacency(adj)

    params = init_params(k_param, INPUT_DIM, EMBED_DIM, NUM_LAYER)

    out = gcn_link_forward(a_hat, nfeat, params, NUM_LAYER)
    out = jax.block_until_ready(out)
    assert out.shape == (N, EMBED_DIM) and out.dtype == jnp.float32
    assert bool(jnp.all(jnp.isfinite(out)))

    # bf16 operands + f32 accumulation vs. the f32 reference: loose tolerance.
    ref = gcn_link_reference(a_hat, nfeat, params, NUM_LAYER)
    err = float(jnp.max(jnp.abs(out - ref)))
    assert err < 2e-1, f"max abs error vs f32 reference too large: {err}"

    # TODO(synk): SkipConnectionLayer variants (Jumping/Residual/Initial/Dense),
    # non-'layer' norm_types, train-mode dropout and econv/edge features are not
    # exercised (args chosen so they are inactive in the reference module).
    print("KERNEL_OK")
</pallas_src>

<mosaic_0001>
module attributes {stable_mosaic.version = 11 : i64} {
  func.func @fused_gcn_kernel(%arg0: i32, %arg1: i32, %arg2: memref<128x128xbf16, #tpu.memory_space<vmem>>, %arg3: memref<128x128xbf16, #tpu.memory_space<vmem>>, %arg4: memref<1x128x128xbf16, #tpu.memory_space<vmem>>, %arg5: memref<1x1x128xf32, #tpu.memory_space<vmem>>, %arg6: memref<128x128xf32, #tpu.memory_space<vmem>>, %arg7: memref<2x128x128xbf16, #tpu.memory_space<vmem>>) attributes {dimension_semantics = [#tpu.dimension_semantics<arbitrary>, #tpu.dimension_semantics<arbitrary>], iteration_bounds = array<i64: 4, 1>, scalar_prefetch = 0 : i64, scratch_operands = 1 : i64, tpu.core_type = #tpu.core_type<tc>, window_params = [{transform_indices = @transform_0, window_bounds = array<i64: 128, 128>}, {transform_indices = @transform_1, window_bounds = array<i64: 128, 128>}, {transform_indices = @transform_2, window_bounds = array<i64: 1, 128, 128>}, {transform_indices = @transform_3, window_bounds = array<i64: 1, 1, 128>}, {transform_indices = @transform_4, window_bounds = array<i64: 128, 128>}]} {
    %c128_i32 = arith.constant 128 : i32
    %0 = arith.muli %arg1, %c128_i32 : i32
    %1 = tpu.assume_multiple %0, 128 : i32
    %c0_i32 = arith.constant 0 : i32
    %2 = arith.cmpi eq, %arg0, %c0_i32 : i32
    %3 = arith.extui %2 : i1 to i32
    %c0_i32_0 = arith.constant 0 : i32
    %4 = arith.cmpi ne, %3, %c0_i32_0 : i32
    scf.if %4 {
      %c0 = arith.constant 0 : index
      %c0_3 = arith.constant 0 : index
      %8 = vector.load %arg3[%c0, %c0_3] : memref<128x128xbf16, #tpu.memory_space<vmem>>, vector<128x128xbf16>
      %c0_4 = arith.constant 0 : index
      %9 = arith.index_cast %1 : i32 to index
      %c0_5 = arith.constant 0 : index
      %10 = vector.load %arg7[%c0_4, %9, %c0_5] : memref<2x128x128xbf16, #tpu.memory_space<vmem>>, vector<1x128x128xbf16>
      %11 = vector.shape_cast %10 : vector<1x128x128xbf16> to vector<128x128xbf16>
      %12 = vector.shape_cast %8 : vector<128x128xbf16> to vector<1x128x128xbf16>
      tpu.vector_store %arg7[%c0_4, %9, %c0_5], %12 {strides = array<i32>} : memref<2x128x128xbf16, #tpu.memory_space<vmem>>, vector<1x128x128xbf16>,
    } else {
    }
    %c0_i32_1 = arith.constant 0 : i32
    %5 = arith.cmpi sgt, %arg0, %c0_i32_1 : i32
    %6 = arith.extui %5 : i1 to i32
    %c0_i32_2 = arith.constant 0 : i32
    %7 = arith.cmpi ne, %6, %c0_i32_2 : i32
    scf.if %7 {
      %c1_i32 = arith.constant 1 : i32
      %8 = arith.subi %arg0, %c1_i32 : i32
      %c2_i32 = arith.constant 2 : i32
      %9 = arith.remsi %8, %c2_i32 : i32
      %c2_i32_3 = arith.constant 2 : i32
      %10 = arith.remsi %arg0, %c2_i32_3 : i32
      %c0 = arith.constant 0 : index
      %c0_4 = arith.constant 0 : index
      %11 = vector.load %arg2[%c0, %c0_4] : memref<128x128xbf16, #tpu.memory_space<vmem>>, vector<128x128xbf16>
      %12 = arith.index_cast %9 : i32 to index
      %c0_5 = arith.constant 0 : index
      %c0_6 = arith.constant 0 : index
      %13 = vector.load %arg7[%12, %c0_5, %c0_6] : memref<2x128x128xbf16, #tpu.memory_space<vmem>>, vector<1x128x128xbf16>
      %14 = vector.shape_cast %13 : vector<1x128x128xbf16> to vector<128x128xbf16>
      %cst = arith.constant dense<0.000000e+00> : vector<128x128xf32>
      %15 = tpu.matmul %11, %14, %cst {dimension_numbers = #tpu.dot_dimension_numbers<[1], [0], [0], [1], [0, 0, 1, 1], [], []>} : vector<128x128xbf16>, vector<128x128xbf16>, vector<128x128xf32> -> vector<128x128xf32>
      %16 = arith.truncf %15 : vector<128x128xf32> to vector<128x128xbf16>
      %c0_7 = arith.constant 0 : index
      %c0_8 = arith.constant 0 : index
      %c0_9 = arith.constant 0 : index
      %17 = vector.load %arg4[%c0_7, %c0_8, %c0_9] : memref<1x128x128xbf16, #tpu.memory_space<vmem>>, vector<1x128x128xbf16>
      %18 = vector.shape_cast %17 : vector<1x128x128xbf16> to vector<128x128xbf16>
      %cst_10 = arith.constant dense<0.000000e+00> : vector<128x128xf32>
      %19 = tpu.matmul %16, %18, %cst_10 {dimension_numbers = #tpu.dot_dimension_numbers<[1], [0], [0], [1], [0, 0, 1, 1], [], []>} : vector<128x128xbf16>, vector<128x128xbf16>, vector<128x128xf32> -> vector<128x128xf32>
      %c0_11 = arith.constant 0 : index
      %c0_12 = arith.constant 0 : index
      %c0_13 = arith.constant 0 : index
      %20 = vector.load %arg5[%c0_11, %c0_12, %c0_13] : memref<1x1x128xf32, #tpu.memory_space<vmem>>, vector<1x1x128xf32>
      %21 = vector.shape_cast %20 : vector<1x1x128xf32> to vector<1x128xf32>
      %22 = vector.broadcast %21 : vector<1x128xf32> to vector<128x128xf32>
      %23 = arith.addf %19, %22 : vector<128x128xf32>
      %c0_i32_14 = arith.constant 0 : i32
      %24 = arith.cmpi eq, %8, %c0_i32_14 : i32
      %25 = arith.extui %24 : i1 to i32
      %c0_i32_15 = arith.constant 0 : i32
      %26 = arith.cmpi ne, %25, %c0_i32_15 : i32
      scf.if %26 {
        %cst_18 = arith.constant 0.000000e+00 : f32
        %30 = vector.broadcast %cst_18 : f32 to vector<128x128xf32>
        %31 = arith.maximumf %23, %30 : vector<128x128xf32>
        %32 = arith.truncf %31 : vector<128x128xf32> to vector<128x128xbf16>
        %33 = arith.index_cast %10 : i32 to index
        %34 = arith.index_cast %1 : i32 to index
        %c0_19 = arith.constant 0 : index
        %35 = vector.load %arg7[%33, %34, %c0_19] : memref<2x128x128xbf16, #tpu.memory_space<vmem>>, vector<1x128x128xbf16>
        %36 = vector.shape_cast %35 : vector<1x128x128xbf16> to vector<128x128xbf16>
        %37 = vector.shape_cast %32 : vector<128x128xbf16> to vector<1x128x128xbf16>
        tpu.vector_store %arg7[%33, %34, %c0_19], %37 {strides = array<i32>} : memref<2x128x128xbf16, #tpu.memory_space<vmem>>, vector<1x128x128xbf16>,
        %c3_i32 = arith.constant 3 : i32
        %38 = arith.cmpi eq, %arg0, %c3_i32 : i32
        %39 = arith.extui %38 : i1 to i32
        %c0_i32_20 = arith.constant 0 : i32
        %40 = arith.cmpi ne, %39, %c0_i32_20 : i32
        scf.if %40 {
          %c0_21 = arith.constant 0 : index
          %c0_22 = arith.constant 0 : index
          %41 = vector.load %arg6[%c0_21, %c0_22] : memref<128x128xf32, #tpu.memory_space<vmem>>, vector<128x128xf32>
          tpu.vector_store %arg6[%c0_21, %c0_22], %31 {strides = array<i32>} : memref<128x128xf32, #tpu.memory_space<vmem>>, vector<128x128xf32>,
        } else {
        }
      } else {
      }
      %c0_i32_16 = arith.constant 0 : i32
      %27 = arith.cmpi sgt, %8, %c0_i32_16 : i32
      %28 = arith.extui %27 : i1 to i32
      %c0_i32_17 = arith.constant 0 : i32
      %29 = arith.cmpi ne, %28, %c0_i32_17 : i32
      scf.if %29 {
        %30 = tpu.iota {dimensions = array<i32: 1>} : vector<1x128xi32>
        %c32_i32 = arith.constant 32 : i32
        %31 = vector.broadcast %c32_i32 : i32 to vector<1x128xi32>
        %32 = arith.cmpi slt, %30, %31 : vector<1x128xi32>
        %cst_18 = arith.constant dense<0.000000e+00> : vector<128xf32>
        %33 = vector.multi_reduction <add>, %23, %cst_18 [1] : vector<128x128xf32> to vector<128xf32>
        %34 = vector.shape_cast %33 : vector<128xf32> to vector<128x1xf32>
        %cst_19 = arith.constant 3.125000e-02 : f32
        %35 = vector.broadcast %cst_19 : f32 to vector<128x1xf32>
        %36 = arith.mulf %34, %35 : vector<128x1xf32>
        %37 = vector.broadcast %36 : vector<128x1xf32> to vector<128x128xf32>
        %38 = arith.subf %23, %37 : vector<128x128xf32>
        %39 = arith.mulf %38, %38 : vector<128x128xf32>
        %cst_20 = arith.constant 0.000000e+00 : f32
        %40 = vector.shape_cast %32 : vector<1x128xi1> to vector<1x128xi1>
        %41 = vector.broadcast %40 : vector<1x128xi1> to vector<128x128xi1>
        %42 = vector.broadcast %cst_20 : f32 to vector<128x128xf32>
        %43 = arith.select %41, %39, %42 : vector<128x128xi1>, vector<128x128xf32>
        %cst_21 = arith.constant dense<0.000000e+00> : vector<128xf32>
        %44 = vector.multi_reduction <add>, %43, %cst_21 [1] : vector<128x128xf32> to vector<128xf32>
        %45 = vector.shape_cast %44 : vector<128xf32> to vector<128x1xf32>
        %cst_22 = arith.constant 3.125000e-02 : f32
        %46 = vector.broadcast %cst_22 : f32 to vector<128x1xf32>
        %47 = arith.mulf %45, %46 : vector<128x1xf32>
        %cst_23 = arith.constant 9.99999974E-6 : f32
        %48 = vector.broadcast %cst_23 : f32 to vector<128x1xf32>
        %49 = arith.addf %47, %48 : vector<128x1xf32>
        %50 = math.rsqrt %49 : vector<128x1xf32>
        %51 = vector.broadcast %50 : vector<128x1xf32> to vector<128x128xf32>
        %52 = arith.mulf %38, %51 : vector<128x128xf32>
        %cst_24 = arith.constant 0.000000e+00 : f32
        %53 = vector.shape_cast %32 : vector<1x128xi1> to vector<1x128xi1>
        %54 = vector.broadcast %53 : vector<1x128xi1> to vector<128x128xi1>
        %55 = vector.broadcast %cst_24 : f32 to vector<128x128xf32>
        %56 = arith.select %54, %52, %55 : vector<128x128xi1>, vector<128x128xf32>
        %c2_i32_25 = arith.constant 2 : i32
        %57 = arith.cmpi slt, %8, %c2_i32_25 : i32
        %cst_26 = arith.constant 0.000000e+00 : f32
        %58 = vector.broadcast %cst_26 : f32 to vector<128x128xf32>
        %59 = arith.maximumf %56, %58 : vector<128x128xf32>
        %60 = arith.select %57, %59, %56 : vector<128x128xf32>
        %61 = arith.truncf %60 : vector<128x128xf32> to vector<128x128xbf16>
        %62 = arith.index_cast %10 : i32 to index
        %63 = arith.index_cast %1 : i32 to index
        %c0_27 = arith.constant 0 : index
        %64 = vector.load %arg7[%62, %63, %c0_27] : memref<2x128x128xbf16, #tpu.memory_space<vmem>>, vector<1x128x128xbf16>
        %65 = vector.shape_cast %64 : vector<1x128x128xbf16> to vector<128x128xbf16>
        %66 = vector.shape_cast %61 : vector<128x128xbf16> to vector<1x128x128xbf16>
        tpu.vector_store %arg7[%62, %63, %c0_27], %66 {strides = array<i32>} : memref<2x128x128xbf16, #tpu.memory_space<vmem>>, vector<1x128x128xbf16>,
        %c3_i32 = arith.constant 3 : i32
        %67 = arith.cmpi eq, %arg0, %c3_i32 : i32
        %68 = arith.extui %67 : i1 to i32
        %c0_i32_28 = arith.constant 0 : i32
        %69 = arith.cmpi ne, %68, %c0_i32_28 : i32
        scf.if %69 {
          %c0_29 = arith.constant 0 : index
          %c0_30 = arith.constant 0 : index
          %70 = vector.load %arg6[%c0_29, %c0_30] : memref<128x128xf32, #tpu.memory_space<vmem>>, vector<128x128xf32>
          tpu.vector_store %arg6[%c0_29, %c0_30], %60 {strides = array<i32>} : memref<128x128xf32, #tpu.memory_space<vmem>>, vector<128x128xf32>,
        } else {
        }
      } else {
      }
    } else {
    }
    return
  }
  func.func @transform_0(%arg0: i32, %arg1: i32) -> (i32, i32) {
    %c0_i32 = arith.constant 0 : i32
    %0 = arith.cmpi eq, %arg0, %c0_i32 : i32
    %c0_i32_0 = arith.constant 0 : i32
    %1 = arith.select %0, %c0_i32_0, %arg1 : i32
    %c0_i32_1 = arith.constant 0 : i32
    %c0_i32_2 = arith.constant 0 : i32
    return %1, %c0_i32_1 : i32, i32
  }
  func.func @transform_1(%arg0: i32, %arg1: i32) -> (i32, i32) {
    %c0_i32 = arith.constant 0 : i32
    %0 = arith.cmpi eq, %arg0, %c0_i32 : i32
    %c0_i32_0 = arith.constant 0 : i32
    %1 = arith.select %0, %arg1, %c0_i32_0 : i32
    %c0_i32_1 = arith.constant 0 : i32
    %c0_i32_2 = arith.constant 0 : i32
    return %1, %c0_i32_1 : i32, i32
  }
  func.func @transform_2(%arg0: i32, %arg1: i32) -> (i32, i32, i32) {
    %c1_i32 = arith.constant 1 : i32
    %0 = arith.subi %arg0, %c1_i32 : i32
    %c0_i32 = arith.constant 0 : i32
    %1 = arith.maxsi %0, %c0_i32 : i32
    %c0_i32_0 = arith.constant 0 : i32
    %c0_i32_1 = arith.constant 0 : i32
    %c0_i32_2 = arith.constant 0 : i32
    return %1, %c0_i32_0, %c0_i32_1 : i32, i32, i32
  }
  func.func @transform_3(%arg0: i32, %arg1: i32) -> (i32, i32, i32) {
    %c1_i32 = arith.constant 1 : i32
    %0 = arith.subi %arg0, %c1_i32 : i32
    %c0_i32 = arith.constant 0 : i32
    %1 = arith.maxsi %0, %c0_i32 : i32
    %c0_i32_0 = arith.constant 0 : i32
    %c0_i32_1 = arith.constant 0 : i32
    %c0_i32_2 = arith.constant 0 : i32
    return %1, %c0_i32_0, %c0_i32_1 : i32, i32, i32
  }
  func.func @transform_4(%arg0: i32, %arg1: i32) -> (i32, i32) {
    %c3_i32 = arith.constant 3 : i32
    %0 = arith.cmpi eq, %arg0, %c3_i32 : i32
    %c0_i32 = arith.constant 0 : i32
    %1 = arith.select %0, %arg1, %c0_i32 : i32
    %c0_i32_0 = arith.constant 0 : i32
    %c0_i32_1 = arith.constant 0 : i32
    return %1, %c0_i32_0 : i32, i32
  }
}

</mosaic_0001>

<bundles_post_ra>
// kernel: tpu_custom_call.1
= control target key start
LH: loop header
LB: loop body
LE: loop exit
PB: predicated region body
PF: predicated region fallthrough
CT: control target
= control target key end

     0   :  { %9 = vsyncpa [#allocation4], 0  ;;  %s2444_s0 = inlined_call_operand.hbm [shape: bf16[128,128], index: 0, kind: input, shape index: {}]   ;;  %s2445_s1 = inlined_call_operand.hbm [shape: bf16[128,128], index: 1, kind: input, shape index: {}]   ;;  %s2446_s2 = inlined_call_operand.hbm [shape: bf16[3,128,128], index: 2, kind: input, shape index: {}]   ;;  %s2447_s3 = inlined_call_operand.vmem [shape: f32[3,1,128], index: 3, kind: input, shape index: {}]   ;;  %s2448_s4 = inlined_call_operand.hbm [shape: f32[128,128], index: 4, kind: output, shape index: {}]  }
   0x1   :  { %11 = vsyncpa [#allocation4 + $0x1], 0 }
   0x2   :  { %12 = vsyncpa [#allocation7], 0 }
   0x3   :  { %14 = vsyncpa [#allocation7 + $0x1], 0 }
   0x4   :  { %15 = vsyncpa [#allocation5], 0 }
   0x5   :  { %17 = vsyncpa [#allocation5 + $0x1], 0  ;;  %s1868_s15 = smov 0   ;;  %s1870_s16 = smov 0  }
   0x6   :  { %s1872_s17 = smov 0   ;;  %s1874_s18 = smov 0  }
   0x7   :  { %s1876_s19 = smov 0   ;;  %s1878_s20 = smov 0  }
   0x8 LB: > { %s1897_s21 = sadd.s32 4294967295, %s1833_s20   ;;  %p115_p0 = scmp.ne.s32.totalorder %s1821_s17, %s1817_s16  ;;  %s1833_s20 = sphi %s1878_s20, %s23_s20   ;;  %s1829_s19 = sphi %s1876_s19, %s2472_s19   ;;  %s1825_s18 = sphi %s1874_s18, %s2471_s18   ;;  %s1821_s17 = sphi %s1872_s17, %s2470_s17   ;;  %s1817_s16 = sphi %s1870_s16, %s2469_s16   ;;  %s1813_s15 = sphi %s1868_s15, %s2468_s15  }
   0x9   : > { %p116_p1 = scmp.eq.s32.totalorder %s1833_s20, 0  ;;  %p121_p2 = scmp.ne.s32.totalorder %s1817_s16, %s1813_s15 }
   0xa   : > { %p2449_p3 = scmp.eq.s32.totalorder %s1897_s21, 0  ;;  %p1540_p6 = scmp.lt.s32.totalorder %s1833_s20, 4 }
   0xb   : > { %p117_p4 = por %p116_p1, %p115_p0  ;;  %s230_s25 = sand.u32 1, %s1833_s20  }
   0xc   : > { %p1907_p5 = por %p2449_p3, %p121_p2  ;;  %p1912_p7 = pnand %p1540_p6, %p116_p1 }
   0xd   : > { %s1835_s26 = smov [#allocation6]   ;;  %p1917_p8 = pnand %p1540_p6, %p117_p4 }
   0xe   : > { %s2452_s23 = scalar_select %p1907_p5, 1, 0 }
   0xf   : > { %s243_s27 = sshll.u32 %s1835_s26, 4  ;;  %s1922_s29 = scalar_lea.sflag [#allocation7], %s230_s25  ;;  %s244_s27 = int_to_ptr.vmem [resolvable:$true] %s243_s27 }
  0x10   : > { %s2454_s28 = scalar_select %p1917_p8, 1, 0 }
  0x11   : > { %s1659_s6 = scalar_lea.hbm %s2445_s1, 1024  ;;  %p1661_p11 = pneg %p1912_p7 }
  0x12   : > { %p1660_p10 = scmp.ne.s32.totalorder %s2445_s1, %s1659_s6  ;;  %p1666_p0 = scmp.lt.u32.totalorder %s1659_s6, %s2445_s1 }
  0x14   : > { %p1662_p12 = pnand %p1661_p11, %p1660_p10 }
  0x16   : > { %p1663_p13 = pneg %p1662_p12 }
  0x18   : > { %p1668_p1 = pnand %p1666_p0, %p1663_p13 }
  0x1a   : > { %1671 = shalt.err (!%p1668_p1)
}
  0x1b   : > { %s1672_s11 = scalar_lea.vmem %s244_s27, 1024  ;;  %s1679_s12 = scalar_lea.vmem %s244_s27, 2048 }
  0x1c   : > { %p1673_p2 = scmp.ne.s32.totalorder %s244_s27, %s1672_s11  ;;  %p1680_p3 = scmp.lt.s32.totalorder %s244_s27, %s244_s27 }
  0x1d   : > { %p1681_p9 = scmp.lt.s32.totalorder %s1679_s12, %s1672_s11 }
  0x1e   : > { %p1675_p4 = pnand %p1673_p2, %p1661_p11 }
  0x1f   : > { %p1682_p5 = por %p1681_p9, %p1680_p3 }
  0x20   : > { %p1676_p6 = pneg %p1675_p4 }
  0x22   : > { %p1683_p8 = pnand %p1682_p5, %p1676_p6 }
  0x24   : > { %1686 = shalt.err (!%p1683_p8)
}
  0x25   : > { %s1836_s13 = smov 64   ;;  %s1837_s14 = smov 4  }
  0x26   : > { %1532 = dma.hbm_to_vmem [thread:$0]  (!%p1912_p7), %s2445_s1, 1024, %s244_s27, %s1922_s29, %s1836_s13, %s1836_s13, %s1837_s14  }
  0x27   : > { %p287_p10 = scmp.lt.s32.totalorder %s1833_s20, 5  ;;  %p2455_p12 = scmp.ge.s32.totalorder %s1833_s20, 1 }
  0x28   : > { %s1838_s30 = smov [#allocation3]   ;;  %s1687_s8 = scalar_lea.hbm %s2444_s0, 1024 }
  0x29   : > { %p1953_p3 = pnand %p2455_p12, %p287_p10  ;;  %s220_s5 = sshll.u32 %s1838_s30, 4  ;;  %s221_s5 = int_to_ptr.vmem [resolvable:$true] %s220_s5 }
  0x2a   : > { %p1688_p5 = scmp.ne.s32.totalorder %s2444_s0, %s1687_s8  ;;  %p1694_p13 = scmp.lt.u32.totalorder %s1687_s8, %s2444_s0 }
  0x2b   : > { %s2456_s26 = scalar_select %p1953_p3, 1, 0 }
  0x2c   : > { %p1690_p8 = pnand %p1688_p5, %p1661_p11 }
  0x2e   : > { %p1691_p9 = pneg %p1690_p8 }
  0x30   : > { %p1696_p0 = pnand %p1694_p13, %p1691_p9 }
  0x32   : > { %1699 = shalt.err (!%p1696_p0)
}
  0x33   : > { %s1700_s12 = scalar_lea.vmem %s221_s5, 1024  ;;  %s1707_s15 = scalar_lea.vmem %s221_s5, 2048 }
  0x34   : > { %p1701_p1 = scmp.ne.s32.totalorder %s221_s5, %s1700_s12  ;;  %p1708_p6 = scmp.lt.s32.totalorder %s221_s5, %s221_s5 }
  0x35   : > { %p1709_p10 = scmp.lt.s32.totalorder %s1707_s15, %s1700_s12 }
  0x36   : > { %p1703_p2 = pnand %p1701_p1, %p1661_p11 }
  0x37   : > { %p1710_p12 = por %p1709_p10, %p1708_p6 }
  0x38   : > { %p1704_p4 = pneg %p1703_p2 }
  0x3a   : > { %p1711_p3 = pnand %p1710_p12, %p1704_p4 }
  0x3c   : > { %1714 = shalt.err (!%p1711_p3)
}
  0x3d   : > { %1529 = dma.hbm_to_vmem [thread:$0]  (!%p1912_p7), %s2444_s0, 1024, %s221_s5, [#allocation4], %s1836_s13, %s1836_s13, %s1837_s14  }
  0x3e   : > { %s35_s6 = sadd.s32 1, %s1829_s19  ;;  %s1344_s7 = sadd.s32 4294967295, %s1829_s19 }
  0x3f   : > { %p37_p11 = scmp.ge.s32.totalorder %s35_s6, 4  ;;  %p100_p5 = scmp.gt.s32.totalorder %s1344_s7, 0 }
  0x40   : > { %s255_s8 = sand.u32 1, %s1821_s17   ;;  %s108_s30 = sadd.s32 1, %s1821_s17 }
  0x41   : > { %s2474_s6 = smov (%p37_p11, %s35_s6), 0  ;;  %s2476_s7 = smov (!%p100_p5, %s1344_s7), 0 }
  0x42   : > { %s1345_s24 = sadd.s32 4294967295, %s2474_s6  ;;  %s1352_s9 = sshll.u32 %s255_s8, 6 }
  0x43   : > { %p103_p3 = scmp.gt.s32.totalorder %s1345_s24, 0  ;;  %s1410_s10 = sshll.u32 %s2476_s7, 10 }
  0x44   : > { %s257_s27 = scalar_lea.vmem [#allocation8], %s1352_s9  ;;  %s1989_s15 = scalar_lea.hbm %s2446_s2, %s1410_s10 }
  0x45   : > { %s267_s11 = sshll.u32 %s257_s27, 4  ;;  %s2478_s24 = smov (!%p103_p3, %s1345_s24), 0  ;;  %s1991_s11 = int_to_ptr.vmem [resolvable:$true] %s267_s11 }
  0x46   : > { %s105_s25 = ssub.s32 %s2476_s7, %s2478_s24  ;;  %s1715_s9 = scalar_lea.hbm %s1989_s15, 1024 }
  0x47   : > { %p1994_p7 = scmp.eq.s32.totalorder %s105_s25, 0  ;;  %p1716_p8 = scmp.ne.s32.totalorder %s1989_s15, %s1715_s9 }
  0x48   : > { %p2458_p9 = scmp.ne.s32.totalorder %s2454_s28, 0  ;;  %s1720_s5 = scalar_lea.hbm %s2446_s2, 3072 }
  0x49   : > { %p1721_p2 = scmp.lt.u32.totalorder %s1989_s15, %s2446_s2  ;;  %p1722_p4 = scmp.lt.u32.totalorder %s1720_s5, %s1715_s9 }
  0x4a   : > { %p1717_p13 = pneg %p2458_p9  ;;  %p1724_p10 = scmp.lt.u32.totalorder %s1715_s9, %s1989_s15 }
  0x4b   : > { %p1723_p6 = por %p1722_p4, %p1721_p2 }
  0x4c   : > { %p1718_p0 = pnand %p1717_p13, %p1716_p8 }
  0x4d   : > { %p1725_p12 = por %p1724_p10, %p1723_p6 }
  0x4e   : > { %p1719_p1 = pneg %p1718_p0 }
  0x50   : > { %p1726_p11 = pnand %p1725_p12, %p1719_p1 }
  0x52   : > { %1729 = shalt.err (!%p1726_p11)
}
  0x53   : > { %s1730_s7 = scalar_lea.vmem %s1991_s11, 1024  ;;  %s1839_s24 = smov [#allocation8]  }
  0x54   : > { %p1731_p5 = scmp.ne.s32.totalorder %s1991_s11, %s1730_s7  ;;  %s1735_s25 = sshll.u32 %s1839_s24, 4  ;;  %s1736_s25 = int_to_ptr.vmem [resolvable:$false] %s1735_s25 }
  0x55   : > { %s1737_s22 = scalar_lea.vmem %s1736_s25, 2048  ;;  %p1738_p0 = scmp.lt.s32.totalorder %s1991_s11, %s1736_s25 }
  0x56   : > { %p1733_p3 = pnand %p1731_p5, %p1717_p13  ;;  %p1739_p2 = scmp.lt.s32.totalorder %s1737_s22, %s1730_s7 }
  0x58   : > { %p1734_p8 = pneg %p1733_p3  ;;  %p1740_p4 = por %p1739_p2, %p1738_p0 }
  0x5a   : > { %p1741_p6 = pnand %p1740_p4, %p1734_p8 }
  0x5c   : > { %1744 = shalt.err (!%p1741_p6)
}
  0x5d   : > { %1535 = dma.hbm_to_vmem [thread:$0]  (!%p2458_p9), %s1989_s15, 1024, %s1991_s11, %s1922_s29, %s1836_s13, %s1836_s13, %s1837_s14  }
  0x5e   : > { %s2032_s9 = scalar_select %p1994_p7, %s1821_s17, %s108_s30  }
  0x5f   : > { %p2459_p13 = scmp.ne.s32.totalorder %s2456_s26, 0 }
  0x60   : > { %p2460_p1 = scmp.eq.s32.totalorder (!%p2459_p13), %s1897_s21, 0 }
  0x61   : > { %291 = sbr.rel (%p2459_p13) target bundleno = 1005 (0x3ed), region = 36 }
  0x68   : > { %1796 = dma.done.wait (%p2460_p1), [#allocation4], 1024   ;;  %p2461_p10 = pmov %p2460_p1 }
  0x69   : > { %s302_s28 = sand.u32 1, %s1897_s21   ;;  %p2462_p12 = pmov %p2460_p1 }
  0x6a   : > { %1798 = vsyncadd (%p2461_p10), [#allocation4], 4294966272  ;;  %s303_s10 = scalar_lea.sflag [#allocation7], %s302_s28 }
  0x6b   : > { %1800 = dma.done.wait (%p2462_p12), %s303_s10, 1024   ;;  %p2463_p9 = pmov %p2460_p1 }
  0x6c   : > { %s313_s29 = sand.u32 1, %s1817_s16   ;;  %p2464_p7 = scmp.ne.s32.totalorder %s2452_s23, 0 }
  0x6d   : > { %1802 = vsyncadd (%p2463_p9), %s303_s10, 4294966272  ;;  %s1359_s13 = sshll.u32 %s313_s29, 6 }
  0x6e   : > { %s2046_s14 = scalar_lea.vmem [#allocation8], %s1359_s13 }
  0x6f   : > { %1804 = dma.done.wait (%p2464_p7), %s303_s10, 1024  }
  0x70   : > { %1806 = vsyncadd (%p2464_p7), %s303_s10, 4294966272  ;;  %s2053_s26 = sadd.s32 4294967295, %s1825_s18  ;;  %p1366_p3 = scmp.ne.s32.totalorder %s1825_s18, 0 }
  0x71   : > { %p366_p11 = scmp.gt.s32.totalorder %s2053_s26, 0  ;;  %p1361_p5 = scmp.lt.s32.totalorder %s2053_s26, 2  ;;  %v1603_v0 = vld [vmem:[#allocation6] sm:$0xff] (!%p1366_p3)   ;;  %v1604_v1 = vld [vmem:[#allocation6 + $0x8] sm:$0xff] (!%p1366_p3)   ;;  %v1605_v2 = vld [vmem:[#allocation6 + $0x10] sm:$0xff] (!%p1366_p3)  }
  0x72   : > { %382 = sbr.rel (%p1366_p3) target bundleno = 121 (0x79), region = 52  ;;  %451 = vst [vmem:[#allocation2] sm:$0xff] (!%p1366_p3), %v1603_v0  ;;  %452 = vst [vmem:[#allocation2 + $0x8] sm:$0xff] (!%p1366_p3), %v1604_v1  ;;  %v1606_v3 = vld [vmem:[#allocation6 + $0x18] sm:$0xff] (!%p1366_p3)   ;;  %v1607_v4 = vld [vmem:[#allocation6 + $0x20] sm:$0xff] (!%p1366_p3)  }
  0x73   : > { %s367_s11 = scalar_select %p366_p11, %s2053_s26, 0 }
  0x74   : > { %453 = vst [vmem:[#allocation2 + $0x10] sm:$0xff] (!%p1366_p3), %v1605_v2  ;;  %454 = vst [vmem:[#allocation2 + $0x18] sm:$0xff] (!%p1366_p3), %v1606_v3  ;;  %v1608_v5 = vld [vmem:[#allocation6 + $0x28] sm:$0xff] (!%p1366_p3)   ;;  %v1609_v6 = vld [vmem:[#allocation6 + $0x30] sm:$0xff] (!%p1366_p3)  }
  0x75   : > { %s2480_s11 = smov (!%p1361_p5, %s367_s11), 2  ;;  %455 = vst [vmem:[#allocation2 + $0x20] sm:$0xff] (!%p1366_p3), %v1607_v4  ;;  %456 = vst [vmem:[#allocation2 + $0x28] sm:$0xff] (!%p1366_p3), %v1608_v5  ;;  %v1610_v7 = vld [vmem:[#allocation6 + $0x38] sm:$0xff] (!%p1366_p3)  }
  0x76   : > { %s370_s8 = scalar_lea.vmem %s2447_s3, %s2480_s11  ;;  %457 = vst [vmem:[#allocation2 + $0x30] sm:$0xff] (!%p1366_p3), %v1609_v6  ;;  %458 = vst [vmem:[#allocation2 + $0x38] sm:$0xff] (!%p1366_p3), %v1610_v7 }
  0x79 PF: > { %p1375_p8 = scmp.le.s32.totalorder %s1825_s18, 0 }
  0x7a   : > { %p464_p0 = scmp.lt.s32.totalorder (!%p1375_p8), %s2053_s26, 0  ;;  %s465_s23 = ssub.s32 (!%p1375_p8), 0, %s2053_s26  ;;  %v1611_v8 = vld [vmem:[#allocation3] sm:$0xff] (!%p1375_p8)   ;;  %v1620_v12 = vld [vmem:[%s2046_s14 + $0x8] sm:$0xff] (!%p1375_p8)   ;;  %v1621_v14 = vld [vmem:[%s2046_s14 + $0x10] sm:$0xff] (!%p1375_p8)  }
  0x7b   : > { %462 = sbr.rel (%p1375_p8) target bundleno = 981 (0x3d5), region = 56  ;;  %s1377_s27 = smin.u32 (!%p1375_p8), %s2053_s26, %s465_s23  ;;  %1464 = vmatprep.mubr.bf16.mxu0 (!%p1375_p8), %v1611_v8  ;;  %v1619_v11 = vld [vmem:[%s2046_s14] sm:$0xff] (!%p1375_p8)   ;;  %v1622_v16 = vld [vmem:[%s2046_s14 + $0x18] sm:$0xff] (!%p1375_p8)   ;;  %v1624_v20 = vld [vmem:[%s2046_s14 + $0x28] sm:$0xff] (!%p1375_p8)  }
  0x7c   : > { %p470_p2 = scmp.lt.s32.totalorder (!%p1375_p8), %s1825_s18, 0  ;;  %s467_s5 = sand.u32 (!%p1375_p8), 1, %s1377_s27   ;;  %1480 = vmatprep.subr.bf16.mxu1 (!%p1375_p8), %v1619_v11  ;;  %v1623_v18 = vld [vmem:[%s2046_s14 + $0x20] sm:$0xff] (!%p1375_p8)   ;;  %v1625_v22 = vld [vmem:[%s2046_s14 + $0x30] sm:$0xff] (!%p1375_p8)   ;;  %v1612_v24 = vld [vmem:[#allocation3 + $0x8] sm:$0xff] (!%p1375_p8)  }
  0x7d   : > { %s471_s12 = ssub.s32 (!%p1375_p8), 0, %s1825_s18  ;;  %s468_s7 = ssub.s32 (!%p1375_p8), 0, %s467_s5  ;;  %1481 = vmatpush3.bf16.msra.mxu1 (!%p1375_p8), %v1619_v11  ;;  %v1613_v25 = vld [vmem:[#allocation3 + $0x10] sm:$0xff] (!%p1375_p8)   ;;  %v1614_v26 = vld [vmem:[#allocation3 + $0x18] sm:$0xff] (!%p1375_p8)   ;;  %v1615_v27 = vld [vmem:[#allocation3 + $0x20] sm:$0xff] (!%p1375_p8)  }
  0x7e   : > { %s1378_s24 = smin.u32 (!%p1375_p8), %s1825_s18, %s471_s12  ;;  %1482 = vmatprep.subr.bf16.mxu1 (!%p1375_p8), %v1620_v12  ;;  %v1616_v28 = vld [vmem:[#allocation3 + $0x28] sm:$0xff] (!%p1375_p8)   ;;  %v1617_v29 = vld [vmem:[#allocation3 + $0x30] sm:$0xff] (!%p1375_p8)   ;;  %v1618_v30 = vld [vmem:[#allocation3 + $0x38] sm:$0xff] (!%p1375_p8)   ;;  %p1398_p4 = scmp.ne.s32.totalorder (!%p1375_p8), %s2053_s26, 0 }
  0x7f   : > { %s473_s25 = sand.u32 (!%p1375_p8), 1, %s1378_s24   ;;  %v1626_v31 = vld [vmem:[%s2046_s14 + $0x38] sm:$0xff] (!%p1375_p8)   ;;  %v1389_v56 = vld [vmem:[%s370_s8] ss:$0 sm:$0xff] (!%p1375_p8) }
  0x80   : > { %s474_s22 = ssub.s32 (!%p1375_p8), 0, %s473_s25 }
  0x81   : > { %1483 = vmatpush3.bf16.msra.mxu1 (!%p1375_p8), %v1620_v12 }
  0x82   : > { %s2482_s7 = smov (!%p464_p0, %s468_s7), %s467_s5  ;;  %s2484_s22 = smov (!%p470_p2, %s474_s22), %s473_s25  ;;  %1484 = vmatprep.subr.bf16.mxu1 %v1621_v14 }
  0x83   : > { %s1413_s28 = sshll.u32 %s2482_s7, 6  ;;  %s1414_s14 = sshll.u32 (!%p1398_p4), %s2484_s22, 6 }
  0x84   : > { %s2076_s10 = scalar_lea.vmem [#allocation2], %s1413_s28  ;;  %s857_s11 = scalar_lea.vmem (!%p1398_p4), [#allocation2], %s1414_s14 }
  0x85   : > { %v495_v9 = vld [vmem:[%s2076_s10] sm:$0xff]  ;;  %v496_v10 = vld [vmem:[%s2076_s10 + $0x8] sm:$0xff]  ;;  %v497_v13 = vld [vmem:[%s2076_s10 + $0x10] sm:$0xff]  ;;  %1485 = vmatpush3.bf16.msra.mxu1 %v1621_v14  ;;  %p1401_p6 = scmp.ne.s32.totalorder (!%p1398_p4), %s1825_s18, 3 }
  0x86   : > { %1448 = vmatprep.subr.bf16.mxu0 %v495_v9  ;;  %v498_v15 = vld [vmem:[%s2076_s10 + $0x18] sm:$0xff]  ;;  %v499_v17 = vld [vmem:[%s2076_s10 + $0x20] sm:$0xff]  ;;  %1486 = vmatprep.subr.bf16.mxu1 %v1622_v16  ;;  %v500_v19 = vld [vmem:[%s2076_s10 + $0x28] sm:$0xff] }
  0x87   : > { %1449 = vmatpush3.bf16.msra.mxu0 %v495_v9  ;;  %v501_v21 = vld [vmem:[%s2076_s10 + $0x30] sm:$0xff]  ;;  %v502_v23 = vld [vmem:[%s2076_s10 + $0x38] sm:$0xff] }
  0x88   : > { %1450 = vmatprep.subr.bf16.mxu0 %v496_v10 }
  0x89   : > { %1487 = vmatpush3.bf16.msra.mxu1 %v1622_v16 }
  0x8a   : > { %1488 = vmatprep.subr.bf16.mxu1 %v1623_v18 }
  0x8b   : > { %1451 = vmatpush3.bf16.msra.mxu0 %v496_v10 }
  0x8c   : > { %1452 = vmatprep.subr.bf16.mxu0 %v497_v13 }
  0x8d   : > { %1489 = vmatpush3.bf16.msra.mxu1 %v1623_v18 }
  0x8e   : > { %1490 = vmatprep.subr.bf16.mxu1 %v1624_v20 }
  0x8f   : > { %1453 = vmatpush3.bf16.msra.mxu0 %v497_v13 }
  0x90   : > { %1454 = vmatprep.subr.bf16.mxu0 %v498_v15 }
  0x91   : > { %1491 = vmatpush3.bf16.msra.mxu1 %v1624_v20 }
  0x92   : > { %1492 = vmatprep.subr.bf16.mxu1 %v1625_v22 }
  0x93   : > { %1455 = vmatpush3.bf16.msra.mxu0 %v498_v15 }
  0x94   : > { %1456 = vmatprep.subr.bf16.mxu0 %v499_v17 }
  0x95   : > { %1493 = vmatpush3.bf16.msra.mxu1 %v1625_v22 }
  0x96   : > { %1494 = vmatprep.subr.bf16.mxu1 %v1626_v31 }
  0x97   : > { %1457 = vmatpush3.bf16.msra.mxu0 %v499_v17 }
  0x98   : > { %1458 = vmatprep.subr.bf16.mxu0 %v500_v19 }
  0x99   : > { %1495 = vmatpush3.bf16.msra.mxu1 %v1626_v31 }
  0x9b   : > { %1459 = vmatpush3.bf16.msra.mxu0 %v500_v19 }
  0x9c   : > { %1460 = vmatprep.subr.bf16.mxu0 %v501_v21 }
  0x9f   : > { %1461 = vmatpush3.bf16.msra.mxu0 %v501_v21 }
  0xa0   : > { %1462 = vmatprep.subr.bf16.mxu0 %v502_v23 }
  0xa3   : > { %1463 = vmatpush3.bf16.msra.mxu0 %v502_v23 }
  0xa6   : > { %1465 = vmatmul.mubr.bf16.vlgmr.msra.gmra.mrb[0].mxu0 %v1612_v24 }
  0xa7   : > { %1468 = vmatprep.mubr.bf16.mxu0 %v1613_v25 }
  0xae   : > { %1469 = vmatmul.mubr.bf16.gmra.mrb[4].mxu0 %v1614_v26 }
  0xaf   : > { %1472 = vmatprep.mubr.bf16.mxu0 %v1615_v27 }
  0xb6   : > { %1473 = vmatmul.mubr.bf16.gmra.mrb[8].mxu0 %v1616_v28 }
  0xb7   : > { %1476 = vmatprep.mubr.bf16.mxu0 %v1617_v29 }
  0xbe   : > { %1477 = vmatmul.mubr.bf16.gmra.mrb[12].mxu0 %v1618_v30 }
 0x179   : > { %v1466_v32 = vpop.f32.mrb[0].mxu0 }
 0x17a   : > { %v585_v33 = vpop.f32.mrb[1].mxu0 }
 0x17b   : > { %v1467_v34 = vpop.f32.mrb[2].mxu0 }
 0x17c   : > { %v649_v35 = vpack.c.bf16 %v1467_v34, %v1466_v32  ;;  %v588_v36 = vpop.f32.mrb[3].mxu0 }
 0x17d   : > { %v648_v37 = vpack.c.bf16 %v588_v36, %v585_v33 }
 0x17f   : > { %1496 = vmatprep.mubr.bf16.mxu1 %v648_v37 }
 0x180   : > { %1497 = vmatmul.mubr.bf16.vlgmr.msra.gmra.mrb[0].mxu1 %v649_v35 }
 0x181   : > { %v1470_v38 = vpop.f32.mrb[4].mxu0 }
 0x182   : > { %v601_v39 = vpop.f32.mrb[5].mxu0 }
 0x183   : > { %v1471_v40 = vpop.f32.mrb[6].mxu0 }
 0x184   : > { %v651_v41 = vpack.c.bf16 %v1471_v40, %v1470_v38  ;;  %v604_v42 = vpop.f32.mrb[7].mxu0 }
 0x185   : > { %v650_v43 = vpack.c.bf16 %v604_v42, %v601_v39 }
 0x187   : > { %1500 = vmatprep.mubr.bf16.mxu1 %v650_v43 }
 0x188   : > { %1501 = vmatmul.mubr.bf16.gmra.mrb[4].mxu1 %v651_v41 }
 0x189   : > { %v1474_v44 = vpop.f32.mrb[8].mxu0 }
 0x18a   : > { %v617_v45 = vpop.f32.mrb[9].mxu0 }
 0x18b   : > { %v1475_v46 = vpop.f32.mrb[10].mxu0 }
 0x18c   : > { %v653_v47 = vpack.c.bf16 %v1475_v46, %v1474_v44  ;;  %v620_v48 = vpop.f32.mrb[11].mxu0 }
 0x18d   : > { %v652_v49 = vpack.c.bf16 %v620_v48, %v617_v45 }
 0x18f   : > { %1504 = vmatprep.mubr.bf16.mxu1 %v652_v49 }
 0x190   : > { %1505 = vmatmul.mubr.bf16.gmra.mrb[8].mxu1 %v653_v47 }
 0x191   : > { %v1478_v50 = vpop.f32.mrb[12].mxu0 }
 0x192   : > { %v633_v51 = vpop.f32.mrb[13].mxu0 }
 0x193   : > { %v1479_v52 = vpop.f32.mrb[14].mxu0 }
 0x194   : > { %v655_v53 = vpack.c.bf16 %v1479_v52, %v1478_v50  ;;  %v636_v54 = vpop.f32.mrb[15].mxu0 }
 0x195   : > { %v654_v55 = vpack.c.bf16 %v636_v54, %v633_v51 }
 0x197   : > { %1508 = vmatprep.mubr.bf16.mxu1 %v654_v55 }
 0x198   : > { %1509 = vmatmul.mubr.bf16.gmra.mrb[12].mxu1 %v655_v53 }
 0x253   : > { %v1498_v57 = vpop.f32.mrb[0].mxu1 }
 0x254   : > { %v2099_v58 = vadd.f32 %v1498_v57, %v1389_v56  ;;  %v761_v59 = vpop.f32.mrb[1].mxu1 }
 0x255   : > { %v2101_v60 = vadd.f32 %v1389_v56, %v761_v59  ;;  %v1499_v61 = vpop.f32.mrb[2].mxu1 }
 0x256   : > { %v2103_v62 = vadd.f32 %v1499_v61, %v1389_v56  ;;  %v764_v63 = vpop.f32.mrb[3].mxu1  ;;  %v830_v27 = vmax.f32 (!%p1398_p4), %v2099_v58, 0.0 }
 0x257   : > { %v2105_v0 = vadd.f32 %v1389_v56, %v764_v63  ;;  %v828_v25 = vmax.f32 (!%p1398_p4), %v2101_v60, 0.0 }
 0x258   : > { %v831_v28 = vmax.f32 (!%p1398_p4), %v2103_v62, 0.0 }
 0x259   : > { %v829_v26 = vmax.f32 (!%p1398_p4), %v2105_v0, 0.0 }
 0x25a   : > { %v845_v34 = vpack.c.bf16 (!%p1398_p4), %v831_v28, %v830_v27 }
 0x25b   : > { %v1502_v1 = vpop.f32.mrb[4].mxu1  ;;  %v844_v33 = vpack.c.bf16 (!%p1398_p4), %v829_v26, %v828_v25 }
 0x25c   : > { %v2107_v2 = vadd.f32 %v1502_v1, %v1389_v56  ;;  %v777_v3 = vpop.f32.mrb[5].mxu1  ;;  %859 = vst [vmem:[%s857_s11 + $0x8] sm:$0xff] (!%p1398_p4), %v845_v34 }
 0x25d   : > { %v2109_v4 = vadd.f32 %v1389_v56, %v777_v3  ;;  %v1503_v5 = vpop.f32.mrb[6].mxu1  ;;  %858 = vst [vmem:[%s857_s11] sm:$0xff] (!%p1398_p4), %v844_v33 }
 0x25e   : > { %v2111_v6 = vadd.f32 %v1503_v5, %v1389_v56  ;;  %v780_v7 = vpop.f32.mrb[7].mxu1  ;;  %v834_v31 = vmax.f32 (!%p1398_p4), %v2107_v2, 0.0 }
 0x25f   : > { %v2113_v8 = vadd.f32 %v1389_v56, %v780_v7  ;;  %v832_v29 = vmax.f32 (!%p1398_p4), %v2109_v4, 0.0 }
 0x260   : > { %v835_v32 = vmax.f32 (!%p1398_p4), %v2111_v6, 0.0 }
 0x261   : > { %v833_v30 = vmax.f32 (!%p1398_p4), %v2113_v8, 0.0 }
 0x262   : > { %v847_v38 = vpack.c.bf16 (!%p1398_p4), %v835_v32, %v834_v31 }
 0x263   : > { %v1506_v9 = vpop.f32.mrb[8].mxu1  ;;  %v846_v37 = vpack.c.bf16 (!%p1398_p4), %v833_v30, %v832_v29 }
 0x264   : > { %v2115_v10 = vadd.f32 %v1506_v9, %v1389_v56  ;;  %v793_v11 = vpop.f32.mrb[9].mxu1  ;;  %861 = vst [vmem:[%s857_s11 + $0x18] sm:$0xff] (!%p1398_p4), %v847_v38 }
 0x265   : > { %v2117_v12 = vadd.f32 %v1389_v56, %v793_v11  ;;  %v1507_v13 = vpop.f32.mrb[10].mxu1  ;;  %860 = vst [vmem:[%s857_s11 + $0x10] sm:$0xff] (!%p1398_p4), %v846_v37 }
 0x266   : > { %v2119_v14 = vadd.f32 %v1507_v13, %v1389_v56  ;;  %v796_v15 = vpop.f32.mrb[11].mxu1  ;;  %v838_v39 = vmax.f32 (!%p1398_p4), %v2115_v10, 0.0 }
 0x267   : > { %v2121_v16 = vadd.f32 %v1389_v56, %v796_v15  ;;  %v836_v35 = vmax.f32 (!%p1398_p4), %v2117_v12, 0.0 }
 0x268   : > { %v839_v40 = vmax.f32 (!%p1398_p4), %v2119_v14, 0.0 }
 0x269   : > { %827 = sbr.rel (%p1398_p4) target bundleno = 633 (0x279), region = 60  ;;  %v837_v36 = vmax.f32 (!%p1398_p4), %v2121_v16, 0.0 }
 0x26a   : > { %v849_v45 = vpack.c.bf16 (!%p1398_p4), %v839_v40, %v838_v39 }
 0x26b   : > { %v1510_v17 = vpop.f32.mrb[12].mxu1  ;;  %v848_v41 = vpack.c.bf16 (!%p1398_p4), %v837_v36, %v836_v35 }
 0x26c   : > { %v2123_v18 = vadd.f32 %v1510_v17, %v1389_v56  ;;  %v809_v19 = vpop.f32.mrb[13].mxu1  ;;  %863 = vst [vmem:[%s857_s11 + $0x28] sm:$0xff] (!%p1398_p4), %v849_v45 }
 0x26d   : > { %v2125_v20 = vadd.f32 %v1389_v56, %v809_v19  ;;  %v1511_v21 = vpop.f32.mrb[14].mxu1  ;;  %862 = vst [vmem:[%s857_s11 + $0x20] sm:$0xff] (!%p1398_p4), %v848_v41 }
 0x26e   : > { %v2127_v22 = vadd.f32 %v1511_v21, %v1389_v56  ;;  %v812_v23 = vpop.f32.mrb[15].mxu1  ;;  %v842_v44 = vmax.f32 (!%p1398_p4), %v2123_v18, 0.0 }
 0x26f   : > { %v2129_v24 = vadd.f32 %v1389_v56, %v812_v23  ;;  %v840_v42 = vmax.f32 (!%p1398_p4), %v2125_v20, 0.0 }
 0x270   : > { %v843_v46 = vmax.f32 %v2127_v22, 0.0  ;;  %869 = sbr.rel (%p1401_p6) target bundleno = 633 (0x279), region = 64  ;;  %870 = vst [vmem:[#allocation9] sm:$0xff] (!%p1401_p6), %v828_v25  ;;  %871 = vst [vmem:[#allocation9 + $0x8] sm:$0xff] (!%p1401_p6), %v829_v26 }
 0x271   : > { %v841_v43 = vmax.f32 %v2129_v24, 0.0  ;;  %872 = vst [vmem:[#allocation9 + $0x10] sm:$0xff] (!%p1401_p6), %v830_v27  ;;  %873 = vst [vmem:[#allocation9 + $0x18] sm:$0xff] (!%p1401_p6), %v831_v28 }
 0x272   : > { %v851_v48 = vpack.c.bf16 %v843_v46, %v842_v44  ;;  %874 = vst [vmem:[#allocation9 + $0x20] sm:$0xff] (!%p1401_p6), %v832_v29  ;;  %875 = vst [vmem:[#allocation9 + $0x28] sm:$0xff] (!%p1401_p6), %v833_v30 }
 0x273   : > { %v850_v47 = vpack.c.bf16 %v841_v43, %v840_v42  ;;  %876 = vst [vmem:[#allocation9 + $0x30] sm:$0xff] (!%p1401_p6), %v834_v31  ;;  %877 = vst [vmem:[#allocation9 + $0x38] sm:$0xff] (!%p1401_p6), %v835_v32 }
 0x274   : > { %865 = vst [vmem:[%s857_s11 + $0x38] sm:$0xff] %v851_v48  ;;  %878 = vst [vmem:[#allocation9 + $0x40] sm:$0xff] (!%p1401_p6), %v836_v35 }
 0x275   : > { %864 = vst [vmem:[%s857_s11 + $0x30] sm:$0xff] %v850_v47  ;;  %879 = vst [vmem:[#allocation9 + $0x48] sm:$0xff] (!%p1401_p6), %v837_v36 }
 0x276   : > { %880 = vst [vmem:[#allocation9 + $0x50] sm:$0xff] (!%p1401_p6), %v838_v39  ;;  %881 = vst [vmem:[#allocation9 + $0x58] sm:$0xff] (!%p1401_p6), %v839_v40 }
 0x277   : > { %882 = vst [vmem:[#allocation9 + $0x60] sm:$0xff] %v840_v42  ;;  %883 = vst [vmem:[#allocation9 + $0x68] sm:$0xff] %v841_v43 }
 0x278   : > { %884 = vst [vmem:[#allocation9 + $0x70] sm:$0xff] %v842_v44  ;;  %885 = vst [vmem:[#allocation9 + $0x78] sm:$0xff] %v843_v46 }
 0x279 PF: > { %p1402_p13 = scmp.le.s32.totalorder %s2053_s26, 0 }
 0x27a   : > { %893 = vadd.xlane.f32.xlu0 (!%p1402_p13), %v2101_v60  ;;  %897 = vadd.xlane.f32.xlu1 (!%p1402_p13), %v2099_v58  ;;  %v890_v49 = vlaneseq (!%p1402_p13)  ;;  %s1415_s26 = sshll.u32 (!%p1402_p13), %s2484_s22, 6  ;;  %p1405_p1 = scmp.ne.s32.totalorder (!%p1402_p13), %s1825_s18, 3 }
 0x27b   : > { %889 = sbr.rel (%p1402_p13) target bundleno = 981 (0x3d5), region = 68  ;;  %s2314_s30 = scalar_lea.vmem (!%p1402_p13), [#allocation2], %s1415_s26 }
 0x27c   : > { %v2167_v52 = vand.u32 (!%p1402_p13), 127, %v890_v49 }
 0x27e   : > { %895 = vadd.xlane.f32.xlu0 (!%p1402_p13), %v2105_v0  ;;  %899 = vadd.xlane.f32.xlu1 (!%p1402_p13), %v2103_v62  ;;  %vm892_vm0 = vcmp.lt.s32.totalorder (!%p1402_p13), %v2167_v52, 32 }
 0x282   : > { %901 = vadd.xlane.f32.xlu0 %v2109_v4  ;;  %903 = vadd.xlane.f32.xlu1 %v2113_v8  ;;  %s1120_s15 = scalar_select %p1361_p5, 1, 0 }
 0x286   : > { %905 = vadd.xlane.f32.xlu0 %v2107_v2  ;;  %907 = vadd.xlane.f32.xlu1 %v2111_v6 }
 0x28a   : > { %909 = vadd.xlane.f32.xlu0 %v2117_v12  ;;  %911 = vadd.xlane.f32.xlu1 %v2121_v16 }
 0x28e   : > { %913 = vadd.xlane.f32.xlu0 %v2115_v10  ;;  %915 = vadd.xlane.f32.xlu1 %v2119_v14 }
 0x292   : > { %917 = vadd.xlane.f32.xlu0 %v2125_v20  ;;  %919 = vadd.xlane.f32.xlu1 %v2129_v24 }
 0x296   : > { %921 = vadd.xlane.f32.xlu0 %v2123_v18  ;;  %923 = vadd.xlane.f32.xlu1 %v2127_v22 }
 0x307   : > { %v894_v50 = vpop.xlane.xlu0 %893  ;;  %v898_v51 = vpop.xlane.xlu1 %897 }
 0x308   : > { %v925_v53 = vmul.f32 0.03125, %v894_v50  ;;  %v927_v54 = vmul.f32 0.03125, %v898_v51 }
 0x30a   : > { %v2170_v55 = vsub.f32 %v2101_v60, %v925_v53  ;;  %v2173_v56 = vsub.f32 %v2099_v58, %v927_v54 }
 0x30b   : > { %v896_v57 = vpop.xlane.xlu0 %895  ;;  %v900_v59 = vpop.xlane.xlu1 %899 }
 0x30c   : > { %v926_v61 = vmul.f32 0.03125, %v896_v57  ;;  %v928_v63 = vmul.f32 0.03125, %v900_v59  ;;  %v957_v1 = vmul.f32 %v2170_v55, %v2170_v55  ;;  %v959_v3 = vmul.f32 %v2173_v56, %v2173_v56 }
 0x30e   : > { %v2181_v5 = vsub.f32 %v2105_v0, %v926_v61  ;;  %v2184_v60 = vsub.f32 %v2103_v62, %v928_v63  ;;  %v975_v58 = vsel %vm892_vm0, %v957_v1, 0.0  ;;  %v977_v11 = vsel %vm892_vm0, %v959_v3, 0.0 }
 0x30f   : > { %v902_v7 = vpop.xlane.xlu0 %901  ;;  %991 = vadd.xlane.f32.xlu0 %v975_v58  ;;  %v904_v9 = vpop.xlane.xlu1 %903 }
 0x310   : > { %v929_v13 = vmul.f32 0.03125, %v902_v7  ;;  %v930_v15 = vmul.f32 0.03125, %v904_v9  ;;  %v958_v17 = vmul.f32 %v2181_v5, %v2181_v5  ;;  %v960_v0 = vmul.f32 %v2184_v60, %v2184_v60 }
 0x312   : > { %v2195_v62 = vsub.f32 %v2109_v4, %v929_v13  ;;  %v2198_v19 = vsub.f32 %v2113_v8, %v930_v15  ;;  %v976_v21 = vsel %vm892_vm0, %v958_v17, 0.0  ;;  %v978_v26 = vsel %vm892_vm0, %v960_v0, 0.0 }
 0x313   : > { %v906_v23 = vpop.xlane.xlu0 %905  ;;  %993 = vadd.xlane.f32.xlu1 %v976_v21  ;;  %995 = vadd.xlane.f32.xlu0 %v977_v11  ;;  %v908_v25 = vpop.xlane.xlu1 %907 }
 0x314   : > { %v931_v27 = vmul.f32 0.03125, %v906_v23  ;;  %v932_v28 = vmul.f32 0.03125, %v908_v25  ;;  %v961_v29 = vmul.f32 %v2195_v62, %v2195_v62  ;;  %v962_v4 = vmul.f32 %v2198_v19, %v2198_v19 }
 0x316   : > { %v2209_v8 = vsub.f32 %v2107_v2, %v931_v27  ;;  %v2212_v30 = vsub.f32 %v2111_v6, %v932_v28  ;;  %v979_v31 = vsel %vm892_vm0, %v961_v29, 0.0  ;;  %v980_v34 = vsel %vm892_vm0, %v962_v4, 0.0 }
 0x317   : > { %v910_v32 = vpop.xlane.xlu0 %909  ;;  %997 = vadd.xlane.f32.xlu1 %v978_v26  ;;  %999 = vadd.xlane.f32.xlu0 %v979_v31  ;;  %v912_v33 = vpop.xlane.xlu1 %911 }
 0x318   : > { %v933_v35 = vmul.f32 0.03125, %v910_v32  ;;  %v934_v36 = vmul.f32 0.03125, %v912_v33  ;;  %v963_v37 = vmul.f32 %v2209_v8, %v2209_v8  ;;  %v964_v2 = vmul.f32 %v2212_v30, %v2212_v30 }
 0x31a   : > { %v2223_v6 = vsub.f32 %v2117_v12, %v933_v35  ;;  %v2226_v38 = vsub.f32 %v2121_v16, %v934_v36  ;;  %v981_v39 = vsel %vm892_vm0, %v963_v37, 0.0  ;;  %v982_v42 = vsel %vm892_vm0, %v964_v2, 0.0 }
 0x31b   : > { %v914_v40 = vpop.xlane.xlu0 %913  ;;  %1001 = vadd.xlane.f32.xlu1 %v980_v34  ;;  %1003 = vadd.xlane.f32.xlu0 %v981_v39  ;;  %v916_v41 = vpop.xlane.xlu1 %915 }
 0x31c   : > { %v935_v43 = vmul.f32 0.03125, %v914_v40  ;;  %v936_v44 = vmul.f32 0.03125, %v916_v41  ;;  %v965_v45 = vmul.f32 %v2223_v6, %v2223_v6  ;;  %v966_v12 = vmul.f32 %v2226_v38, %v2226_v38 }
 0x31e   : > { %v2237_v16 = vsub.f32 %v2115_v10, %v935_v43  ;;  %v2240_v46 = vsub.f32 %v2119_v14, %v936_v44  ;;  %v983_v47 = vsel %vm892_vm0, %v965_v45, 0.0  ;;  %v984_v50 = vsel %vm892_vm0, %v966_v12, 0.0 }
 0x31f   : > { %v918_v48 = vpop.xlane.xlu0 %917  ;;  %1005 = vadd.xlane.f32.xlu1 %v982_v42  ;;  %1007 = vadd.xlane.f32.xlu0 %v983_v47  ;;  %v920_v49 = vpop.xlane.xlu1 %919 }
 0x320   : > { %v937_v51 = vmul.f32 0.03125, %v918_v48  ;;  %v938_v53 = vmul.f32 0.03125, %v920_v49  ;;  %v967_v54 = vmul.f32 %v2237_v16, %v2237_v16  ;;  %v968_v10 = vmul.f32 %v2240_v46, %v2240_v46 }
 0x321   : > { %v1121_v49 = vstv %s1120_s15 }
 0x322   : > { %v2251_v14 = vsub.f32 %v2125_v20, %v937_v51  ;;  %v2254_v57 = vsub.f32 %v2129_v24, %v938_v53  ;;  %v985_v59 = vsel %vm892_vm0, %v967_v54, 0.0  ;;  %v986_v1 = vsel %vm892_vm0, %v968_v10, 0.0 }
 0x323   : > { %v922_v61 = vpop.xlane.xlu0 %921  ;;  %1009 = vadd.xlane.f32.xlu1 %v984_v50  ;;  %1011 = vadd.xlane.f32.xlu0 %v985_v59  ;;  %v924_v63 = vpop.xlane.xlu1 %923  ;;  %vm2288_vm1 = vcmp.eq.s32.totalorder %v1121_v49, 1 }
 0x324   : > { %v939_v3 = vmul.f32 0.03125, %v922_v61  ;;  %v940_v58 = vmul.f32 0.03125, %v924_v63  ;;  %v969_v7 = vmul.f32 %v2251_v14, %v2251_v14  ;;  %v970_v20 = vmul.f32 %v2254_v57, %v2254_v57 }
 0x326   : > { %v2265_v24 = vsub.f32 %v2123_v18, %v939_v3  ;;  %v2268_v9 = vsub.f32 %v2127_v22, %v940_v58  ;;  %v987_v11 = vsel %vm892_vm0, %v969_v7, 0.0  ;;  %v988_v13 = vsel %vm892_vm0, %v970_v20, 0.0 }
 0x327   : > { %1013 = vadd.xlane.f32.xlu1 %v986_v1  ;;  %1015 = vadd.xlane.f32.xlu0 %v987_v11 }
 0x328   : > { %v971_v15 = vmul.f32 %v2265_v24, %v2265_v24  ;;  %v972_v17 = vmul.f32 %v2268_v9, %v2268_v9 }
 0x32a   : > { %v989_v18 = vsel %vm892_vm0, %v971_v15, 0.0  ;;  %v990_v22 = vsel %vm892_vm0, %v972_v17, 0.0 }
 0x32b   : > { %1017 = vadd.xlane.f32.xlu1 %v988_v13  ;;  %1019 = vadd.xlane.f32.xlu0 %v989_v18 }
 0x32f   : > { %1021 = vadd.xlane.f32.xlu1 %v990_v22 }
 0x39c   : > { %v992_v0 = vpop.xlane.xlu0 %991 }
 0x39d   : > { %v1023_v21 = vmul.f32 0.03125, %v992_v0 }
 0x39f   : > { %v1039_v23 = vadd.f32 1e-05, %v1023_v21 }
 0x3a0   : > { %v994_v25 = vpop.xlane.xlu1 %993  ;;  %v996_v26 = vpop.xlane.xlu0 %995 }
 0x3a1   : > { %1627 = vrsqrt.f32 %v1039_v23  ;;  %v1024_v27 = vmul.f32 0.03125, %v994_v25  ;;  %v1025_v28 = vmul.f32 0.03125, %v996_v26 }
 0x3a3   : > { %v1040_v29 = vadd.f32 1e-05, %v1024_v27  ;;  %v1041_v4 = vadd.f32 1e-05, %v1025_v28 }
 0x3a4   : > { %v998_v31 = vpop.xlane.xlu1 %997  ;;  %v1000_v32 = vpop.xlane.xlu0 %999 }
 0x3a5   : > { %1629 = vrsqrt.f32 %v1040_v29  ;;  %v1026_v33 = vmul.f32 0.03125, %v998_v31  ;;  %v1027_v34 = vmul.f32 0.03125, %v1000_v32 }
 0x3a6   : > { %1631 = vrsqrt.f32 %v1041_v4 }
 0x3a7   : > { %v1042_v35 = vadd.f32 1e-05, %v1026_v33  ;;  %v1043_v36 = vadd.f32 1e-05, %v1027_v34 }
 0x3a8   : > { %v1002_v37 = vpop.xlane.xlu1 %1001  ;;  %v1004_v2 = vpop.xlane.xlu0 %1003 }
 0x3a9   : > { %1633 = vrsqrt.f32 %v1042_v35  ;;  %v1028_v39 = vmul.f32 0.03125, %v1002_v37  ;;  %v1029_v40 = vmul.f32 0.03125, %v1004_v2 }
 0x3aa   : > { %1635 = vrsqrt.f32 %v1043_v36 }
 0x3ab   : > { %v1628_v41 = vpop.eup %1627  ;;  %v1044_v42 = vadd.f32 1e-05, %v1028_v39  ;;  %v1045_v43 = vadd.f32 1e-05, %v1029_v40 }
 0x3ac   : > { %v1071_v44 = vmul.f32 %v1628_v41, %v2170_v55  ;;  %v1006_v45 = vpop.xlane.xlu1 %1005  ;;  %v1008_v12 = vpop.xlane.xlu0 %1007 }
 0x3ad   : > { %1637 = vrsqrt.f32 %v1044_v42  ;;  %v1030_v47 = vmul.f32 0.03125, %v1006_v45  ;;  %v1031_v48 = vmul.f32 0.03125, %v1008_v12 }
 0x3ae   : > { %v1087_v50 = vsel %vm892_vm0, %v1071_v44, 0.0  ;;  %1639 = vrsqrt.f32 %v1045_v43 }
 0x3af   : > { %v1630_v51 = vpop.eup %1629  ;;  %v1046_v53 = vadd.f32 1e-05, %v1030_v47  ;;  %v1047_v54 = vadd.f32 1e-05, %v1031_v48  ;;  %v1104_v59 = vmax.f32 %v1087_v50, 0.0 }
 0x3b0   : > { %v1632_v10 = vpop.eup %1631  ;;  %v1072_v61 = vmul.f32 %v1630_v51, %v2181_v5  ;;  %v1010_v63 = vpop.xlane.xlu1 %1009 }
 0x3b1   : > { %v1012_v55 = vpop.xlane.xlu0 %1011  ;;  %v1073_v3 = vmul.f32 %v1632_v10, %v2173_v56  ;;  %1641 = vrsqrt.f32 %v1046_v53  ;;  %v1032_v58 = vmul.f32 0.03125, %v1010_v63  ;;  %v2300_v18 = vsel %vm2288_vm1, %v1104_v59, %v1087_v50 }
 0x3b2   : > { %v1088_v7 = vsel %vm892_vm0, %v1072_v61, 0.0  ;;  %1643 = vrsqrt.f32 %v1047_v54  ;;  %v1033_v20 = vmul.f32 0.03125, %v1012_v55  ;;  %1165 = vst [vmem:[#allocation9] sm:$0xff] (!%p1405_p1), %v2300_v18 }
 0x3b3   : > { %v1634_v11 = vpop.eup %1633  ;;  %v1105_v13 = vmax.f32 %v1088_v7, 0.0  ;;  %v1089_v5 = vsel %vm892_vm0, %v1073_v3, 0.0  ;;  %v1048_v15 = vadd.f32 1e-05, %v1032_v58 }
 0x3b4   : > { %v1636_v17 = vpop.eup %1635  ;;  %v1106_v56 = vmax.f32 %v1089_v5, 0.0  ;;  %v1074_v22 = vmul.f32 %v1634_v11, %v2184_v60  ;;  %v1049_v0 = vadd.f32 1e-05, %v1033_v20  ;;  %v1014_v21 = vpop.xlane.xlu1 %1013 }
 0x3b5   : > { %v1016_v23 = vpop.xlane.xlu0 %1015  ;;  %v2305_v25 = vsel %vm2288_vm1, %v1105_v13, %v1088_v7  ;;  %v1075_v26 = vmul.f32 %v1636_v17, %v2195_v62  ;;  %1645 = vrsqrt.f32 %v1048_v15  ;;  %v1034_v27 = vmul.f32 0.03125, %v1014_v21 }
 0x3b6   : > { %v1139_v28 = vpack.c.bf16 %v2305_v25, %v2300_v18  ;;  %v1090_v29 = vsel %vm892_vm0, %v1074_v22, 0.0  ;;  %1647 = vrsqrt.f32 %v1049_v0  ;;  %v1035_v33 = vmul.f32 0.03125, %v1016_v23  ;;  %1166 = vst [vmem:[#allocation9 + $0x8] sm:$0xff] (!%p1405_p1), %v2305_v25 }
 0x3b7   : > { %v1638_v4 = vpop.eup %1637  ;;  %v1107_v60 = vmax.f32 %v1090_v29, 0.0  ;;  %v1091_v31 = vsel %vm892_vm0, %v1075_v26, 0.0  ;;  %v1050_v32 = vadd.f32 1e-05, %v1034_v27  ;;  %v2319_v62 = vsel %vm2288_vm1, %v1106_v56, %v1089_v5 }
 0x3b8   : > { %v1640_v34 = vpop.eup %1639  ;;  %1153 = vst [vmem:[%s2314_s30] sm:$0xff] %v1139_v28  ;;  %v1108_v35 = vmax.f32 %v1091_v31, 0.0  ;;  %v1076_v36 = vmul.f32 %v1638_v4, %v2198_v19  ;;  %v1018_v37 = vpop.xlane.xlu1 %1017  ;;  %v1051_v41 = vadd.f32 1e-05, %v1035_v33  ;;  %1167 = vst [vmem:[#allocation9 + $0x10] sm:$0xff] (!%p1405_p1), %v2319_v62 }
 0x3b9   : > { %v1020_v2 = vpop.xlane.xlu0 %1019  ;;  %v2324_v39 = vsel %vm2288_vm1, %v1107_v60, %v1090_v29  ;;  %v1077_v40 = vmul.f32 %v1640_v34, %v2209_v8  ;;  %1649 = vrsqrt.f32 %v1050_v32  ;;  %v1036_v44 = vmul.f32 0.03125, %v1018_v37 }
 0x3ba   : > { %v1140_v42 = vpack.c.bf16 %v2324_v39, %v2319_v62  ;;  %v1092_v43 = vsel %vm892_vm0, %v1076_v36, 0.0  ;;  %1651 = vrsqrt.f32 %v1051_v41  ;;  %v1037_v47 = vmul.f32 0.03125, %v1020_v2  ;;  %1168 = vst [vmem:[#allocation9 + $0x18] sm:$0xff] (!%p1405_p1), %v2324_v39 }
 0x3bb   : > { %v1642_v45 = vpop.eup %1641  ;;  %v1109_v19 = vmax.f32 %v1092_v43, 0.0  ;;  %v1093_v12 = vsel %vm892_vm0, %v1077_v40, 0.0  ;;  %v2336_v8 = vsel %vm2288_vm1, %v1108_v35, %v1091_v31  ;;  %v1052_v51 = vadd.f32 1e-05, %v1036_v44 }
 0x3bc   : > { %v1644_v48 = vpop.eup %1643  ;;  %1154 = vst [vmem:[%s2314_s30 + $0x8] sm:$0xff] %v1140_v42  ;;  %v1110_v49 = vmax.f32 %v1093_v12, 0.0  ;;  %v1078_v50 = vmul.f32 %v1642_v45, %v2212_v30  ;;  %v1022_v53 = vpop.xlane.xlu1 %1021  ;;  %v1053_v59 = vadd.f32 1e-05, %v1037_v47  ;;  %1169 = vst [vmem:[#allocation9 + $0x20] sm:$0xff] (!%p1405_p1), %v2336_v8 }
 0x3bd   : > { %v2341_v54 = vsel %vm2288_vm1, %v1109_v19, %v1092_v43  ;;  %v1079_v10 = vmul.f32 %v1644_v48, %v2223_v6  ;;  %v1038_v61 = vmul.f32 0.03125, %v1022_v53  ;;  %1653 = vrsqrt.f32 %v1052_v51 }
 0x3be   : > { %v1141_v63 = vpack.c.bf16 %v2341_v54, %v2336_v8  ;;  %v1094_v55 = vsel %vm892_vm0, %v1078_v50, 0.0  ;;  %1655 = vrsqrt.f32 %v1053_v59  ;;  %v1129_v6 = vsel %vm2288_vm1, %v1110_v49, %v1093_v12  ;;  %1170 = vst [vmem:[#allocation9 + $0x28] sm:$0xff] (!%p1405_p1), %v2341_v54 }
 0x3bf   : > { %v1646_v3 = vpop.eup %1645  ;;  %v1111_v30 = vmax.f32 %v1094_v55, 0.0  ;;  %v1095_v58 = vsel %vm892_vm0, %v1079_v10, 0.0  ;;  %v1054_v7 = vadd.f32 1e-05, %v1038_v61  ;;  %1171 = vst [vmem:[#allocation9 + $0x30] sm:$0xff] (!%p1405_p1), %v1129_v6 }
 0x3c0   : > { %v1648_v20 = vpop.eup %1647  ;;  %1155 = vst [vmem:[%s2314_s30 + $0x10] sm:$0xff] %v1141_v63  ;;  %v1080_v11 = vmul.f32 %v1646_v3, %v2226_v38  ;;  %v1112_v5 = vmax.f32 %v1095_v58, 0.0 }
 0x3c1   : > { %v1130_v13 = vsel %vm2288_vm1, %v1111_v30, %v1094_v55  ;;  %v1081_v15 = vmul.f32 %v1648_v20, %v2237_v16  ;;  %1657 = vrsqrt.f32 %v1054_v7 }
 0x3c2   : > { %v1142_v17 = vpack.c.bf16 %v1130_v13, %v1129_v6  ;;  %v1096_v56 = vsel %vm892_vm0, %v1080_v11, 0.0  ;;  %v1131_v26 = vsel %vm2288_vm1, %v1112_v5, %v1095_v58  ;;  %1172 = vst [vmem:[#allocation9 + $0x38] sm:$0xff] (!%p1405_p1), %v1130_v13 }
 0x3c3   : > { %v1650_v22 = vpop.eup %1649  ;;  %v1113_v0 = vmax.f32 %v1096_v56, 0.0  ;;  %v1097_v21 = vsel %vm892_vm0, %v1081_v15, 0.0  ;;  %1173 = vst [vmem:[#allocation9 + $0x40] sm:$0xff] (!%p1405_p1), %v1131_v26 }
 0x3c4   : > { %1156 = vst [vmem:[%s2314_s30 + $0x18] sm:$0xff] %v1142_v17  ;;  %v1082_v38 = vmul.f32 %v1650_v22, %v2240_v46  ;;  %v1652_v23 = vpop.eup %1651  ;;  %v1114_v27 = vmax.f32 %v1097_v21, 0.0 }
 0x3c5   : > { %v1132_v16 = vsel %vm2288_vm1, %v1113_v0, %v1096_v56  ;;  %v1083_v4 = vmul.f32 %v1652_v23, %v2251_v14 }
 0x3c6   : > { %v1143_v28 = vpack.c.bf16 %v1132_v16, %v1131_v26  ;;  %v1098_v29 = vsel %vm892_vm0, %v1082_v38, 0.0  ;;  %v1133_v33 = vsel %vm2288_vm1, %v1114_v27, %v1097_v21  ;;  %1174 = vst [vmem:[#allocation9 + $0x48] sm:$0xff] (!%p1405_p1), %v1132_v16 }
 0x3c7   : > { %v1115_v60 = vmax.f32 %v1098_v29, 0.0  ;;  %v1654_v31 = vpop.eup %1653  ;;  %v1099_v46 = vsel %vm892_vm0, %v1083_v4, 0.0  ;;  %1175 = vst [vmem:[#allocation9 + $0x50] sm:$0xff] (!%p1405_p1), %v1133_v33 }
 0x3c8   : > { %1157 = vst [vmem:[%s2314_s30 + $0x20] sm:$0xff] %v1143_v28  ;;  %v1656_v32 = vpop.eup %1655  ;;  %v1084_v35 = vmul.f32 %v1654_v31, %v2254_v57  ;;  %v1116_v37 = vmax.f32 %v1099_v46, 0.0 }
 0x3c9   : > { %v1134_v34 = vsel %vm2288_vm1, %v1115_v60, %v1098_v29  ;;  %v1085_v14 = vmul.f32 %v1656_v32, %v2265_v24 }
 0x3ca   : > { %v1144_v36 = vpack.c.bf16 %v1134_v34, %v1133_v33  ;;  %v1100_v40 = vsel %vm892_vm0, %v1084_v35, 0.0  ;;  %v1135_v57 = vsel %vm2288_vm1, %v1116_v37, %v1099_v46  ;;  %1176 = vst [vmem:[#allocation9 + $0x58] sm:$0xff] (!%p1405_p1), %v1134_v34 }
 0x3cb   : > { %v1658_v2 = vpop.eup %1657  ;;  %v1117_v41 = vmax.f32 %v1100_v40, 0.0  ;;  %v1101_v42 = vsel %vm892_vm0, %v1085_v14, 0.0  ;;  %1177 = vst [vmem:[#allocation9 + $0x60] sm:$0xff] (!%p1405_p1), %v1135_v57 }
 0x3cc   : > { %1158 = vst [vmem:[%s2314_s30 + $0x28] sm:$0xff] %v1144_v36  ;;  %v1086_v43 = vmul.f32 %v1658_v2, %v2268_v9  ;;  %v1118_v44 = vmax.f32 %v1101_v42, 0.0 }
 0x3cd   : > { %v1136_v45 = vsel %vm2288_vm1, %v1117_v41, %v1100_v40 }
 0x3ce   : > { %v1102_v24 = vsel %vm892_vm0, %v1086_v43, 0.0  ;;  %v1145_v19 = vpack.c.bf16 %v1136_v45, %v1135_v57  ;;  %v1137_v47 = vsel %vm2288_vm1, %v1118_v44, %v1101_v42  ;;  %1164 = sbr.rel (%p1405_p1) target bundleno = 981 (0x3d5), region = 72  ;;  %1178 = vst [vmem:[#allocation9 + $0x68] sm:$0xff] (!%p1405_p1), %v1136_v45 }
 0x3cf   : > { %v1119_v12 = vmax.f32 %v1102_v24, 0.0  ;;  %1179 = vst [vmem:[#allocation9 + $0x70] sm:$0xff] (!%p1405_p1), %v1137_v47 }
 0x3d0   : > { %1159 = vst [vmem:[%s2314_s30 + $0x30] sm:$0xff] %v1145_v19 }
 0x3d1   : > { %v1138_v48 = vsel %vm2288_vm1, %v1119_v12, %v1102_v24 }
 0x3d2   : > { %v1146_v9 = vpack.c.bf16 %v1138_v48, %v1137_v47  ;;  %1180 = vst [vmem:[#allocation9 + $0x78] sm:$0xff] (!%p1405_p1), %v1138_v48 }
 0x3d4   : > { %1160 = vst [vmem:[%s2314_s30 + $0x38] sm:$0xff] %v1146_v9 }
 0x3d5 PF: > { %p1545_p10 = scmp.eq.s32.totalorder %s1897_s21, 3  ;;  %s1840_s18 = smov [#allocation9]  }
 0x3d6   : > { %s1197_s8 = sshll.u32 %s1840_s18, 4  ;;  %s1198_s8 = int_to_ptr.vmem [resolvable:$true] %s1197_s8 }
 0x3d7   : > { %s1745_s23 = scalar_lea.vmem %s1198_s8, 2048  ;;  %s1751_s27 = scalar_lea.vmem %s1198_s8, 4096 }
 0x3d8   : > { %p1746_p12 = scmp.ne.s32.totalorder %s1198_s8, %s1745_s23  ;;  %p1752_p11 = scmp.lt.s32.totalorder %s1198_s8, %s1198_s8 }
 0x3d9   : > { %p1753_p5 = scmp.lt.s32.totalorder %s1751_s27, %s1745_s23 }
 0x3da   : > { %p1747_p9 = pnand %p1746_p12, %p1545_p10 }
 0x3db   : > { %p1754_p3 = por %p1753_p5, %p1752_p11 }
 0x3dc   : > { %p1748_p7 = pneg %p1747_p9 }
 0x3de   : > { %p1755_p8 = pnand %p1754_p3, %p1748_p7 }
 0x3e0   : > { %1758 = shalt.err (!%p1755_p8)
}
 0x3e1   : > { %s1759_s7 = scalar_lea.hbm %s2448_s4, 2048 }
 0x3e2   : > { %p1760_p0 = scmp.ne.s32.totalorder %s2448_s4, %s1759_s7  ;;  %p1765_p6 = scmp.lt.u32.totalorder %s1759_s7, %s2448_s4 }
 0x3e4   : > { %p1761_p2 = pnand %p1760_p0, %p1545_p10 }
 0x3e6   : > { %p1762_p4 = pneg %p1761_p2 }
 0x3e8   : > { %p1767_p13 = pnand %p1765_p6, %p1762_p4 }
 0x3ea   : > { %1770 = shalt.err (!%p1767_p13)
}
 0x3eb   : > { %s1841_s10 = smov 128   ;;  %s1842_s29 = smov 8  }
 0x3ec   : > { %1523 = dma.vmem_to_hbm [thread:$0]  (%p1545_p10), %s1198_s8, 2048, %s2448_s4, [#allocation5], %s1841_s10, %s1841_s10, %s1842_s29  }
 0x3ed PF: > { %p1546_p1 = scmp.ge.s32.totalorder %s1833_s20, 2  ;;  %s2467_s11 = sadd.s32 4294967294, %s1833_s20  }
 0x3ee   : > { %p1547_p12 = scmp.eq.s32.totalorder %s2467_s11, 3 }
 0x3f0   : > { %p1537_p9 = pnand %p1547_p12, %p1546_p1 }
 0x3f2   : > { %1808 = dma.done.wait (!%p1537_p9), [#allocation5], 2048  }
 0x3f3   : > { %1810 = vsyncadd (!%p1537_p9), [#allocation5], 4294965248  ;;  %s23_s20 = sadd.s32 1, %s1833_s20   ;;  %s2468_s15 = smov %s1817_s16 }
 0x3f4   : > { %p20_p7 = scmp.ge.s32.totalorder %s23_s20, 6   ;;  %s2469_s16 = smov %s1821_s17 }
 0x3f5   : > { %s2470_s17 = smov %s2032_s9  ;;  %s2471_s18 = smov %s1829_s19 }
 0x3f6   : > { %s2472_s19 = smov %s2474_s6  ;;  %22 = sbr.rel (!%p20_p7) target bundleno = 8 (0x8), region = 136 }
 0x3fd   :  { %1218 = vsyncpa [#allocation4], 1 }
 0x3fe   :  { %1220 = vsyncpa [#allocation4 + $0x1], 1 }
 0x3ff   :  { %1221 = vsyncpa [#allocation7], 1 }
 0x400   :  { %1223 = vsyncpa [#allocation7 + $0x1], 1 }
 0x401   :  { %1224 = vsyncpa [#allocation5], 1 }
 0x402   :  { %1226 = vsyncpa [#allocation5 + $0x1], 1 }

</bundles_post_ra>
